<compile_context>
chip_gen: v5e
topology: v5e:2x2
jax: 0.10.0
libtpu: 0.0.40
codegen_flags: <defaults>
</compile_context>

<pallas_src>
import jax
import jax.numpy as jnp
from jax import lax
from jax.experimental import pallas as pl
from jax.experimental.pallas import tpu as pltpu

# ---- small, module-consistent sizes -----------------------------------------
B, CIN, H, W = 2, 3, 16, 16        # pixel_values: [B, 3, H, W] (NCHW, like HF)
HW = H * W
BHW = B * HW                       # batch folded into the lane dimension (512)
CIN_PAD = 8                        # 1x1-conv contraction padded to sublane granule
D = 32                             # hidden / mask-embedding dim
Q = 16                             # number of object queries
NUM_CLASSES = 4                    # num_labels passed to CustomModel
NUM_LABELS = NUM_CLASSES + 1       # + "no object" class (Mask2Former convention)
CPAD8 = 8                          # class-logit columns padded to sublane granule
W1C = D + CPAD8                    # fused (layer-1 | class-head) output width = 40
SEG = 128                          # lane-aligned stride of the packed weight slab
WPACK = 3 * SEG                    # packed slab width: [w1|wc] , w2 , w3


# ---- fused kernel ------------------------------------------------------------
def _fused_forward_kernel(x_ref, pw_ref, qe_ref, w_ref, b_ref,
                          clog_ref, mlog_ref, sem_ref):
    # x_ref : (CIN_PAD, B*HW) bf16 lane-dense pixels; row CIN == 1.0 (bias lane)
    # pw_ref: (D, CIN_PAD)    bf16; column CIN holds the pixel-embedding bias
    # qe_ref: (Q, D)          bf16 learned query embeddings (decoder stub)
    # w_ref : (D, 3*SEG)      bf16; segments at lanes 0/128/256: [w1|wc], w2, w3
    # b_ref : (1, 3*SEG)      f32 biases; padded class columns carry -1e9
    # outs  : clog (Q, 8), mlog (Q, B*HW), sem (8, B*HW)   all f32

    # 1) pixel embedding — bias rides inside the padded K=8 MXU pass
    pix = jnp.dot(pw_ref[...], x_ref[...],
                  preferred_element_type=jnp.float32)                       # (D, BHW)

    # 2) query heads — batch-invariant, computed exactly once;
    #    class head fused into MLP layer 1 (same LHS q)
    q = qe_ref[...]                                                         # (Q, D) bf16
    out1 = jnp.dot(q, w_ref[:, 0:W1C],
                   preferred_element_type=jnp.float32) + b_ref[:, 0:W1C]    # (Q, 40)
    h1 = jnp.maximum(out1[:, :D], 0.0)
    clog = out1[:, D:W1C]                                                   # (Q, 8)
    clog_ref[...] = clog                                                    # cols>=5 ~ -1e9

    h2 = jnp.maximum(
        jnp.dot(h1.astype(jnp.bfloat16), w_ref[:, SEG:SEG + D],
                preferred_element_type=jnp.float32) + b_ref[:, SEG:SEG + D], 0.0)
    memb = jnp.dot(h2.astype(jnp.bfloat16), w_ref[:, 2 * SEG:2 * SEG + D],
                   preferred_element_type=jnp.float32) + b_ref[:, 2 * SEG:2 * SEG + D]

    # 3) mask logits: (Q, D) @ (D, B*HW) — lane-dense output, no transpose
    mlog = jnp.dot(memb.astype(jnp.bfloat16), pix.astype(jnp.bfloat16),
                   preferred_element_type=jnp.float32)                      # (Q, BHW)
    mlog_ref[...] = mlog

    # 4) semantic segmentation: f32 softmax over 8 padded class columns
    #    (-1e9 pad -> exact 5-label softmax), zero the "no object" + pad
    #    columns, contract the query axis with f32 sigmoid(mask).
    cls = jax.nn.softmax(clog, axis=-1)                                     # (Q, 8) f32
    col = lax.broadcasted_iota(jnp.int32, (Q, CPAD8), 1)
    cls = jnp.where(col < NUM_CLASSES, cls, 0.0)
    mprob = jax.nn.sigmoid(mlog)                                            # (Q, BHW) f32
    sem_ref[...] = lax.dot_general(
        cls.astype(jnp.bfloat16), mprob.astype(jnp.bfloat16),
        dimension_numbers=(((0,), (0,)), ((), ())),
        preferred_element_type=jnp.float32)                                 # (8, BHW)


# ---- parameters --------------------------------------------------------------
def init_params(key):
    ks = jax.random.split(key, 6)
    s = lambda k, shp, scale: jax.random.normal(k, shp, jnp.float32) * scale

    # pixel-embedding 1x1 conv, bias folded into column CIN of the padded weight
    pix_w = s(ks[0], (D, CIN), 0.2)
    pix_b = jnp.zeros((D,), jnp.float32)
    pw_aug = (jnp.zeros((D, CIN_PAD), jnp.float32)
              .at[:, :CIN].set(pix_w)
              .at[:, CIN].set(pix_b))

    query_embed = s(ks[1], (Q, D), 0.5)

    w1 = s(ks[2], (D, D), 0.2); b1 = jnp.zeros((D,), jnp.float32)
    w2 = s(ks[3], (D, D), 0.2); b2 = jnp.zeros((D,), jnp.float32)
    w3 = s(ks[4], (D, D), 0.2); b3 = jnp.zeros((D,), jnp.float32)
    cls_w = s(ks[5], (D, NUM_LABELS), 0.2)
    cls_b = jnp.zeros((NUM_LABELS,), jnp.float32)

    # one weight slab: segment starts at 128-lane boundaries so the in-kernel
    # static ref slices are lane-aligned
    w_pack = (jnp.zeros((D, WPACK), jnp.float32)
              .at[:, 0:D].set(w1)
              .at[:, D:D + NUM_LABELS].set(cls_w)
              .at[:, SEG:SEG + D].set(w2)
              .at[:, 2 * SEG:2 * SEG + D].set(w3))
    # one bias row (f32); padded class columns get -1e9 so the 8-wide softmax
    # inside the kernel equals the 5-label softmax
    b_pack = (jnp.zeros((1, WPACK), jnp.float32)
              .at[0, 0:D].set(b1)
              .at[0, D:D + NUM_LABELS].set(cls_b)
              .at[0, D + NUM_LABELS:D + CPAD8].set(-1e9)
              .at[0, SEG:SEG + D].set(b2)
              .at[0, 2 * SEG:2 * SEG + D].set(b3))

    return {
        "pw_aug": pw_aug.astype(jnp.bfloat16),          # (D, CIN_PAD)
        "query_embed": query_embed.astype(jnp.bfloat16),  # (Q, D)
        "w_pack": w_pack.astype(jnp.bfloat16),          # (D, 3*SEG)
        "b_pack": b_pack,                               # (1, 3*SEG) f32
    }


# ---- wrapper -----------------------------------------------------------------
_VMEM_SPEC = pl.BlockSpec(memory_space=pltpu.MemorySpace.VMEM)


@jax.jit
def custom_model_forward(pixel_values, params):
    """pixel_values: [B, CIN, H, W] float32 (NCHW, matching the PyTorch module)."""
    # NCHW -> lane-dense (CIN_PAD, B*HW) in one fused build: real channels in
    # rows 0..CIN-1, bias lane (1.0) in row CIN, remaining pad rows zero.
    x_flat = jnp.transpose(pixel_values, (1, 0, 2, 3)).reshape(CIN, BHW)
    x_aug = (jnp.zeros((CIN_PAD, BHW), jnp.float32)
             .at[:CIN].set(x_flat)
             .at[CIN].set(1.0)).astype(jnp.bfloat16)

    clog8, mlog, sem8 = pl.pallas_call(
        _fused_forward_kernel,
        out_shape=(jax.ShapeDtypeStruct((Q, CPAD8), jnp.float32),
                   jax.ShapeDtypeStruct((Q, BHW), jnp.float32),
                   jax.ShapeDtypeStruct((CPAD8, BHW), jnp.float32)),
        in_specs=[_VMEM_SPEC] * 5,
        out_specs=(_VMEM_SPEC, _VMEM_SPEC, _VMEM_SPEC),
        cost_estimate=pl.CostEstimate(flops=1_030_000, transcendentals=8_320,
                                      bytes_accessed=86_000),
    )(x_aug, params["pw_aug"], params["query_embed"],
      params["w_pack"], params["b_pack"])

    # layout plumbing back to the module's NCHW-style outputs (outside kernel)
    class_logits = jnp.broadcast_to(clog8[None, :, :NUM_LABELS], (B, Q, NUM_LABELS))
    masks = jnp.transpose(mlog.reshape(Q, B, H, W), (1, 0, 2, 3))                 # [B, Q, H, W]
    semantic = jnp.transpose(sem8[:NUM_CLASSES].reshape(NUM_CLASSES, B, H, W),
                             (1, 0, 2, 3))                                        # [B, C, H, W]

    return {
        "class_queries_logits": class_logits,        # [B, Q, NUM_CLASSES+1]
        "masks_queries_logits": masks,               # [B, Q, H, W]
        "semantic_segmentation": semantic,           # [B, NUM_CLASSES, H, W]
    }


if __name__ == "__main__":
    key = jax.random.PRNGKey(0)
    k_in, k_par = jax.random.split(key)
    pixel_values = jax.random.normal(k_in, (B, CIN, H, W), jnp.float32)   # NCHW like PyTorch
    params = init_params(k_par)

    outputs = custom_model_forward(pixel_values, params)
    jax.block_until_ready(outputs)

    assert outputs["class_queries_logits"].shape == (B, Q, NUM_LABELS)
    assert outputs["masks_queries_logits"].shape == (B, Q, H, W)
    assert outputs["semantic_segmentation"].shape == (B, NUM_CLASSES, H, W)
    assert bool(jnp.isfinite(outputs["semantic_segmentation"]).all())
    print("KERNEL_OK")
</pallas_src>

<mosaic_0001>
module attributes {stable_mosaic.version = 11 : i64} {
  func.func @_fused_forward_kernel(%arg0: memref<8x512xbf16, #tpu.memory_space<vmem>>, %arg1: memref<32x8xbf16, #tpu.memory_space<vmem>>, %arg2: memref<16x32xbf16, #tpu.memory_space<vmem>>, %arg3: memref<32x384xbf16, #tpu.memory_space<vmem>>, %arg4: memref<1x384xf32, #tpu.memory_space<vmem>>, %arg5: memref<16x8xf32, #tpu.memory_space<vmem>>, %arg6: memref<16x512xf32, #tpu.memory_space<vmem>>, %arg7: memref<8x512xf32, #tpu.memory_space<vmem>>) attributes {dimension_semantics = [], scalar_prefetch = 0 : i64, scratch_operands = 0 : i64, tpu.core_type = #tpu.core_type<tc>} {
    %c0 = arith.constant 0 : index
    %c0_0 = arith.constant 0 : index
    %0 = vector.load %arg1[%c0, %c0_0] : memref<32x8xbf16, #tpu.memory_space<vmem>>, vector<32x8xbf16>
    %c0_1 = arith.constant 0 : index
    %c0_2 = arith.constant 0 : index
    %1 = vector.load %arg0[%c0_1, %c0_2] : memref<8x512xbf16, #tpu.memory_space<vmem>>, vector<8x512xbf16>
    %cst = arith.constant dense<0.000000e+00> : vector<32x512xf32>
    %2 = tpu.matmul %0, %1, %cst {dimension_numbers = #tpu.dot_dimension_numbers<[1], [0], [0], [1], [0, 0, 1, 1], [], []>} : vector<32x8xbf16>, vector<8x512xbf16>, vector<32x512xf32> -> vector<32x512xf32>
    %c0_3 = arith.constant 0 : index
    %c0_4 = arith.constant 0 : index
    %3 = vector.load %arg2[%c0_3, %c0_4] : memref<16x32xbf16, #tpu.memory_space<vmem>>, vector<16x32xbf16>
    %c0_5 = arith.constant 0 : index
    %c0_6 = arith.constant 0 : index
    %4 = vector.load %arg3[%c0_5, %c0_6] : memref<32x384xbf16, #tpu.memory_space<vmem>>, vector<32x40xbf16>
    %cst_7 = arith.constant dense<0.000000e+00> : vector<16x40xf32>
    %5 = tpu.matmul %3, %4, %cst_7 {dimension_numbers = #tpu.dot_dimension_numbers<[1], [0], [0], [1], [0, 0, 1, 1], [], []>} : vector<16x32xbf16>, vector<32x40xbf16>, vector<16x40xf32> -> vector<16x40xf32>
    %c0_8 = arith.constant 0 : index
    %c0_9 = arith.constant 0 : index
    %6 = vector.load %arg4[%c0_8, %c0_9] : memref<1x384xf32, #tpu.memory_space<vmem>>, vector<1x40xf32>
    %7 = vector.broadcast %6 : vector<1x40xf32> to vector<16x40xf32>
    %8 = arith.addf %5, %7 : vector<16x40xf32>
    %9 = vector.extract_strided_slice %8 {offsets = [0, 0], sizes = [16, 32], strides = [1, 1]} : vector<16x40xf32> to vector<16x32xf32>
    %cst_10 = arith.constant 0.000000e+00 : f32
    %10 = vector.broadcast %cst_10 : f32 to vector<16x32xf32>
    %11 = arith.maximumf %9, %10 : vector<16x32xf32>
    %12 = vector.extract_strided_slice %8 {offsets = [0, 32], sizes = [16, 8], strides = [1, 1]} : vector<16x40xf32> to vector<16x8xf32>
    %c0_11 = arith.constant 0 : index
    %c0_12 = arith.constant 0 : index
    %13 = vector.load %arg5[%c0_11, %c0_12] : memref<16x8xf32, #tpu.memory_space<vmem>>, vector<16x8xf32>
    tpu.vector_store %arg5[%c0_11, %c0_12], %12 {strides = array<i32>} : memref<16x8xf32, #tpu.memory_space<vmem>>, vector<16x8xf32>,
    %14 = arith.truncf %11 : vector<16x32xf32> to vector<16x32xbf16>
    %c0_13 = arith.constant 0 : index
    %c128 = arith.constant 128 : index
    %15 = vector.load %arg3[%c0_13, %c128] : memref<32x384xbf16, #tpu.memory_space<vmem>>, vector<32x32xbf16>
    %cst_14 = arith.constant dense<0.000000e+00> : vector<16x32xf32>
    %16 = tpu.matmul %14, %15, %cst_14 {dimension_numbers = #tpu.dot_dimension_numbers<[1], [0], [0], [1], [0, 0, 1, 1], [], []>} : vector<16x32xbf16>, vector<32x32xbf16>, vector<16x32xf32> -> vector<16x32xf32>
    %c0_15 = arith.constant 0 : index
    %c128_16 = arith.constant 128 : index
    %17 = vector.load %arg4[%c0_15, %c128_16] : memref<1x384xf32, #tpu.memory_space<vmem>>, vector<1x32xf32>
    %18 = vector.broadcast %17 : vector<1x32xf32> to vector<16x32xf32>
    %19 = arith.addf %16, %18 : vector<16x32xf32>
    %cst_17 = arith.constant 0.000000e+00 : f32
    %20 = vector.broadcast %cst_17 : f32 to vector<16x32xf32>
    %21 = arith.maximumf %19, %20 : vector<16x32xf32>
    %22 = arith.truncf %21 : vector<16x32xf32> to vector<16x32xbf16>
    %c0_18 = arith.constant 0 : index
    %c256 = arith.constant 256 : index
    %23 = vector.load %arg3[%c0_18, %c256] : memref<32x384xbf16, #tpu.memory_space<vmem>>, vector<32x32xbf16>
    %cst_19 = arith.constant dense<0.000000e+00> : vector<16x32xf32>
    %24 = tpu.matmul %22, %23, %cst_19 {dimension_numbers = #tpu.dot_dimension_numbers<[1], [0], [0], [1], [0, 0, 1, 1], [], []>} : vector<16x32xbf16>, vector<32x32xbf16>, vector<16x32xf32> -> vector<16x32xf32>
    %c0_20 = arith.constant 0 : index
    %c256_21 = arith.constant 256 : index
    %25 = vector.load %arg4[%c0_20, %c256_21] : memref<1x384xf32, #tpu.memory_space<vmem>>, vector<1x32xf32>
    %26 = vector.broadcast %25 : vector<1x32xf32> to vector<16x32xf32>
    %27 = arith.addf %24, %26 : vector<16x32xf32>
    %28 = arith.truncf %27 : vector<16x32xf32> to vector<16x32xbf16>
    %29 = arith.truncf %2 : vector<32x512xf32> to vector<32x512xbf16>
    %cst_22 = arith.constant dense<0.000000e+00> : vector<16x512xf32>
    %30 = tpu.matmul %28, %29, %cst_22 {dimension_numbers = #tpu.dot_dimension_numbers<[1], [0], [0], [1], [0, 0, 1, 1], [], []>} : vector<16x32xbf16>, vector<32x512xbf16>, vector<16x512xf32> -> vector<16x512xf32>
    %c0_23 = arith.constant 0 : index
    %c0_24 = arith.constant 0 : index
    %31 = vector.load %arg6[%c0_23, %c0_24] : memref<16x512xf32, #tpu.memory_space<vmem>>, vector<16x512xf32>
    tpu.vector_store %arg6[%c0_23, %c0_24], %30 {strides = array<i32>} : memref<16x512xf32, #tpu.memory_space<vmem>>, vector<16x512xf32>,
    %cst_25 = arith.constant dense<0xFF800000> : vector<16xf32>
    %32 = vector.multi_reduction <maximumf>, %12, %cst_25 [1] : vector<16x8xf32> to vector<16xf32>
    %cst_26 = arith.constant 0xFF800000 : f32
    %33 = vector.broadcast %cst_26 : f32 to vector<16xf32>
    %34 = arith.maximumf %33, %32 : vector<16xf32>
    %35 = vector.shape_cast %34 : vector<16xf32> to vector<16x1xf32>
    %36 = vector.broadcast %35 : vector<16x1xf32> to vector<16x8xf32>
    %37 = arith.subf %12, %36 : vector<16x8xf32>
    %38 = math.exp %37 : vector<16x8xf32>
    %cst_27 = arith.constant dense<0.000000e+00> : vector<16xf32>
    %39 = vector.multi_reduction <add>, %38, %cst_27 [1] : vector<16x8xf32> to vector<16xf32>
    %40 = vector.shape_cast %39 : vector<16xf32> to vector<16x1xf32>
    %41 = vector.broadcast %40 : vector<16x1xf32> to vector<16x8xf32>
    %42 = arith.divf %38, %41 : vector<16x8xf32>
    %43 = tpu.iota {dimensions = array<i32: 1>} : vector<16x8xi32>
    %c4_i32 = arith.constant 4 : i32
    %44 = vector.broadcast %c4_i32 : i32 to vector<16x8xi32>
    %45 = arith.cmpi slt, %43, %44 : vector<16x8xi32>
    %cst_28 = arith.constant 0.000000e+00 : f32
    %46 = vector.broadcast %cst_28 : f32 to vector<16x8xf32>
    %47 = arith.select %45, %42, %46 : vector<16x8xi1>, vector<16x8xf32>
    %48 = arith.negf %30 : vector<16x512xf32>
    %49 = math.exp %48 : vector<16x512xf32>
    %cst_29 = arith.constant 1.000000e+00 : f32
    %50 = vector.broadcast %cst_29 : f32 to vector<16x512xf32>
    %51 = arith.addf %50, %49 : vector<16x512xf32>
    %52 = arith.divf %50, %51 : vector<16x512xf32>
    %53 = arith.truncf %47 : vector<16x8xf32> to vector<16x8xbf16>
    %54 = arith.truncf %52 : vector<16x512xf32> to vector<16x512xbf16>
    %cst_30 = arith.constant dense<0.000000e+00> : vector<8x512xf32>
    %55 = tpu.matmul %53, %54, %cst_30 {dimension_numbers = #tpu.dot_dimension_numbers<[0], [0], [1], [1], [0, 1, 1, 1], [], []>} : vector<16x8xbf16>, vector<16x512xbf16>, vector<8x512xf32> -> vector<8x512xf32>
    %c0_31 = arith.constant 0 : index
    %c0_32 = arith.constant 0 : index
    %56 = vector.load %arg7[%c0_31, %c0_32] : memref<8x512xf32, #tpu.memory_space<vmem>>, vector<8x512xf32>
    tpu.vector_store %arg7[%c0_31, %c0_32], %55 {strides = array<i32>} : memref<8x512xf32, #tpu.memory_space<vmem>>, vector<8x512xf32>,
    return
  }
}

</mosaic_0001>

<bundles_post_ra>
// kernel: custom_model_forward.1
= control target key start
LH: loop header
LB: loop body
LE: loop exit
PB: predicated region body
PF: predicated region fallthrough
CT: control target
= control target key end

     0   :  { %vm57_vm0 = vcmask 1043456   ;;  %vm50_vm1 = vcmask 64512   ;;  %vm173_vm2 = vcmask 261120   ;;  %vm357_vm3 = vcmask 326912   ;;  %s794_s11 = smov 96   ;;  %s1152_s0 = inlined_call_operand.vmem [shape: bf16[8,512], index: 0, kind: input, shape index: {}]   ;;  %s1153_s3 = inlined_call_operand.vmem [shape: bf16[32,384], index: 3, kind: input, shape index: {}]   ;;  %s1154_s1 = inlined_call_operand.vmem [shape: bf16[32,8], index: 1, kind: input, shape index: {}]   ;;  %s1155_s2 = inlined_call_operand.vmem [shape: bf16[16,32], index: 2, kind: input, shape index: {}]   ;;  %s1156_s4 = inlined_call_operand.vmem [shape: f32[1,384], index: 4, kind: input, shape index: {}]   ;;  %s1157_s5 = inlined_call_operand.vmem [shape: f32[16,8], index: 5, kind: output, shape index: {0}]   ;;  %s1158_s6 = inlined_call_operand.vmem [shape: f32[16,512], index: 6, kind: output, shape index: {1}]   ;;  %s1159_s7 = inlined_call_operand.vmem [shape: f32[8,512], index: 7, kind: output, shape index: {2}]  }
   0x1   :  { %v28_v0 = vld [vmem:[%s1152_s0] sm:$0xff]  ;;  %v698_v1 = vld [vmem:[%s1153_s3 + $0x18] sm:$0xf]  ;;  %v738_v7 = vld [vmem:[%s1153_s3 + $0x8] sm:$0xf0] }
   0x2   :  { %v42_v2 = vunpack.c.l.b16 %v28_v0  ;;  %v739_v3 = vld [vmem:[%s1153_s3 + $0x20] sm:$0xf0]  ;;  %v694_v6 = vld [vmem:[%s1153_s3] sm:$0xf]  ;;  %v736_v11 = vld [vmem:[%s1154_s1 + $0x8] sm:$0xff]  ;;  %v43_v13 = vunpack.c.h.b16 %v28_v0 }
   0x3   :  { %v699_v5 = vor.u32 %v739_v3, %v698_v1  ;;  %v854_v9 = vld [vmem:[%s1154_s1] sm:$0xff]  ;;  %v695_v10 = vor.u32 %v738_v7, %v694_v6  ;;  %v29_v16 = vld [vmem:[%s1152_s0 + $0x8] sm:$0xff]  ;;  %v707_v21 = vld [vmem:[%s1153_s3 + $0x1c] sm:$0xf] }
   0x4   :  { %v46_v4 = vpack.c.b16 %v42_v2, %v42_v2  ;;  %v737_v12 = vld [vmem:[%s1155_s2] sm:$0xff]  ;;  %v47_v14 = vpack.c.b16 %v43_v13, %v43_v13  ;;  %v45_v17 = vunpack.c.h.b16 %v29_v16  ;;  %v741_v22 = vld [vmem:[%s1153_s3 + $0x24] sm:$0xf0]  ;;  %v740_v26 = vld [vmem:[%s1153_s3 + $0xc] sm:$0xf0]  ;;  %v44_v43 = vunpack.c.l.b16 %v29_v16 }
   0x5   :  { %v708_v23 = vor.u32 %v741_v22, %v707_v21  ;;  %v703_v25 = vld [vmem:[%s1153_s3 + $0x4] sm:$0xf]  ;;  %v751_v32 = vld [vmem:[%s1156_s4] ss:$0 sm:$0xff]  ;;  %v743_v52 = vld [vmem:[%s1153_s3 + $0x28] sm:$0xf0] }
   0x6   :  { %v59_v8 = vsel %vm57_vm0, %v46_v4, 0  ;;  %v62_v15 = vsel %vm57_vm0, %v47_v14, 0  ;;  %v49_v18 = vpack.c.b16 %v45_v17, %v45_v17  ;;  %v704_v27 = vor.u32 %v740_v26, %v703_v25  ;;  %v716_v51 = vld [vmem:[%s1153_s3 + $0x20] sm:$0xf]  ;;  %v712_v54 = vld [vmem:[%s1153_s3 + $0x8] sm:$0xf] }
   0x7   :  { %77 = vmatpush.bf16.msra.mxu0 %v59_v8  ;;  %96 = vmatpush.bf16.msra.mxu1 %v62_v15  ;;  %v48_v45 = vpack.c.b16 %v44_v43, %v44_v43  ;;  %v717_v53 = vor.u32 %v743_v52, %v716_v51  ;;  %v742_v55 = vld [vmem:[%s1153_s3 + $0x10] sm:$0xf0]  ;;  %v752_v2 = vld [vmem:[%s1156_s4 + $0x1] ss:$0 sm:$0xff]  ;;  %v753_v26 = vld [vmem:[%s1156_s4 + $0x2] ss:$0 sm:$0xff] }
   0x8   :  { %v68_v19 = vsel %vm57_vm0, %v49_v18, 0  ;;  %v713_v56 = vor.u32 %v742_v55, %v712_v54 }
   0x9   :  { %134 = vmatpush.bf16.msra.mxu3 %v68_v19  ;;  %v65_v46 = vsel %vm57_vm0, %v48_v45, 0 }
   0xa   :  { %680 = vmatmul.msk.bf16.vlgmr.msra.gmra.mxu0 %vm50_vm1, %v854_v9  ;;  %682 = vmatmul.msk.bf16.vlgmr.msra.gmra.mxu1 %vm50_vm1, %v854_v9 }
   0xb   :  { %183 = vmatpush.bf16.msrb.mxu0 %v699_v5  ;;  %233 = vmatpush.bf16.msrb.mxu1 %v708_v23 }
   0xc   :  { %686 = vmatmul.msk.bf16.vlgmr.msra.gmra.mxu3 %vm50_vm1, %v854_v9  ;;  %115 = vmatpush.bf16.msra.mxu2 %v65_v46 }
   0xf   :  { %184 = vmatpush.bf16.msrb.mxu0 %v695_v10  ;;  %234 = vmatpush.bf16.msrb.mxu1 %v704_v27 }
  0x10   :  { %684 = vmatmul.msk.bf16.vlgmr.msra.gmra.mxu2 %vm50_vm1, %v854_v9 }
  0x11   :  { %273 = vmatpush.bf16.msrb.mxu2 %v717_v53 }
  0x15   :  { %274 = vmatpush.bf16.msrb.mxu2 %v713_v56 }
  0x1a   :  { %681 = vmatmul.msk.bf16.gmra.mxu0 %vm50_vm1, %v736_v11  ;;  %683 = vmatmul.msk.bf16.gmra.mxu1 %vm50_vm1, %v736_v11 }
  0x1c   :  { %687 = vmatmul.msk.bf16.gmra.mxu3 %vm50_vm1, %v736_v11 }
  0x20   :  { %685 = vmatmul.msk.bf16.gmra.mxu2 %vm50_vm1, %v736_v11 }
  0x2a   :  { %700 = vmatmul.msk.bf16.vlgmr.msrb.gmra.mxu0 %vm173_vm2, %v737_v12 }
  0x87   :  { %v79_v20 = vpop.f32.mrf.mxu0  ;;  %v98_v42 = vpop.f32.mrf.mxu1 }
  0x8f   :  { %v81_v24 = vpop.f32.mrf.mxu0  ;;  %v100_v44 = vpop.f32.mrf.mxu1 }
  0x90   :  { %v282_v31 = vpack.c.bf16 %v81_v24, %v79_v20  ;;  %v283_v50 = vpack.c.bf16 %v100_v44, %v98_v42  ;;  %v136_v10 = vpop.f32.mrf.mxu3 }
  0x93   :  { %v117_v9 = vpop.f32.mrf.mxu2 }
  0x97   :  { %v84_v28 = vpop.f32.mrf.mxu0  ;;  %v103_v47 = vpop.f32.mrf.mxu1 }
  0x98   :  { %v138_v12 = vpop.f32.mrf.mxu3 }
  0x99   :  { %v285_v24 = vpack.c.bf16 %v138_v12, %v136_v10 }
  0x9b   :  { %v119_v11 = vpop.f32.mrf.mxu2 }
  0x9c   :  { %v284_v19 = vpack.c.bf16 %v119_v11, %v117_v9 }
  0x9f   :  { %v86_v29 = vpop.f32.mrf.mxu0  ;;  %v105_v48 = vpop.f32.mrf.mxu1 }
  0xa0   :  { %v286_v30 = vpack.c.bf16 %v86_v29, %v84_v28  ;;  %v287_v49 = vpack.c.bf16 %v105_v48, %v103_v47  ;;  %v141_v18 = vpop.f32.mrf.mxu3 }
  0xa2   :  { %299 = vmatpush.bf16.msrb.mxu3 %v286_v30  ;;  %313 = vmatpush.bf16.msra.mxu0 %v287_v49 }
  0xa3   :  { %v122_v13 = vpop.f32.mrf.mxu2 }
  0xa6   :  { %300 = vmatpush.bf16.msrb.mxu3 %v282_v31  ;;  %314 = vmatpush.bf16.msra.mxu0 %v283_v50 }
  0xa7   :  { %v186_v33 = vpop.f32.mrf.mxu0 }
  0xa8   :  { %v892_v34 = vadd.f32 %v751_v32, %v186_v33  ;;  %v143_v22 = vpop.f32.mrf.mxu3 }
  0xa9   :  { %v289_v23 = vpack.c.bf16 %v143_v22, %v141_v18 }
  0xaa   :  { %v358_v35 = vsel %vm357_vm3, %v892_v34, -inf  ;;  %v191_v38 = vmax.f32 %v892_v34, 0.0 }
  0xab   :  { %359 = vmax.xlane.f32.xlu0 %v358_v35  ;;  %v124_v16 = vpop.f32.mrf.mxu2  ;;  %341 = vmatpush.bf16.msra.mxu2 %v289_v23 }
  0xac   :  { %v288_v17 = vpack.c.bf16 %v124_v16, %v122_v13 }
  0xae   :  { %327 = vmatpush.bf16.msra.mxu1 %v288_v17 }
  0xaf   :  { %v188_v36 = vpop.f32.mrf.mxu0  ;;  %342 = vmatpush.bf16.msra.mxu2 %v285_v24 }
  0xb0   :  { %v895_v37 = vadd.f32 %v751_v32, %v188_v36 }
  0xb2   :  { %v192_v39 = vmax.f32 %v895_v37, 0.0  ;;  %v361_v40 = vsel %vm357_vm3, %v895_v37, -inf  ;;  %328 = vmatpush.bf16.msra.mxu1 %v284_v19 }
  0xb3   :  { %362 = vmax.xlane.f32.xlu0 %v361_v40 }
  0xb4   :  { %v203_v41 = vpack.c.bf16 %v192_v39, %v191_v38 }
  0xb6   :  { %709 = vmatmul.msk.bf16.vlgmr.msrb.gmra.mxu1 %vm173_vm2, %v203_v41 }
 0x11e   :  { %v360_v57 = vpop.xlane.xlu0 %359 }
 0x11f   :  { %v364_v58 = vsub.f32 %v892_v34, %v360_v57 }
 0x121   :  { %v366_v59 = vmul.f32 1.442695, %v364_v58 }
 0x123   :  { %754 = vpow2.f32 %v366_v59 }
 0x126   :  { %v363_v60 = vpop.xlane.xlu0 %362 }
 0x127   :  { %v365_v61 = vsub.f32 %v895_v37, %v363_v60 }
 0x129   :  { %v919_v62 = vpop.eup %754  ;;  %v368_v63 = vmul.f32 1.442695, %v365_v61 }
 0x12a   :  { %372 = vrot.lane.b32.xlu1 %v919_v62, %s794_s11 }
 0x12b   :  { %756 = vpow2.f32 %v368_v63 }
 0x131   :  { %v923_v0 = vpop.eup %756 }
 0x132   :  { %374 = vrot.lane.b32.xlu1 %v923_v0, %s794_s11 }
 0x133   :  { %v236_v1 = vpop.f32.mrf.mxu1 }
 0x134   :  { %v237_v3 = vadd.f32 %v752_v2, %v236_v1 }
 0x136   :  { %v241_v6 = vmax.f32 %v237_v3, 0.0 }
 0x13b   :  { %v238_v4 = vpop.f32.mrf.mxu1 }
 0x13c   :  { %v239_v5 = vadd.f32 %v752_v2, %v238_v4 }
 0x13e   :  { %v242_v7 = vmax.f32 %v239_v5, 0.0 }
 0x140   :  { %v243_v8 = vpack.c.bf16 %v242_v7, %v241_v6 }
 0x142   :  { %718 = vmatmul.msk.bf16.vlgmr.msrb.gmra.mxu2 %vm173_vm2, %v243_v8 }
 0x19c   :  { %v373_v14 = vpop.permute.xlu1 %372 }
 0x19d   :  { %v378_v15 = vsel %vm50_vm1, %v373_v14, 0.0 }
 0x19e   :  { %379 = vadd.xlane.f32.xlu2 %v378_v15 }
 0x1a4   :  { %v375_v20 = vpop.permute.xlu1 %374 }
 0x1a5   :  { %v381_v21 = vsel %vm50_vm1, %v375_v20, 0.0 }
 0x1a6   :  { %382 = vadd.xlane.f32.xlu2 %v381_v21 }
 0x1be   :  { %195 = vrot.lane.b32.xlu2 %v892_v34, %s794_s11 }
 0x1c5   :  { %v276_v25 = vpop.f32.mrf.mxu2 }
 0x1c6   :  { %v277_v28 = vadd.f32 %v753_v26, %v276_v25 }
 0x1cd   :  { %v278_v27 = vpop.f32.mrf.mxu2 }
 0x1ce   :  { %v279_v29 = vadd.f32 %v753_v26, %v278_v27 }
 0x1d0   :  { %v281_v30 = vpack.c.bf16 %v279_v29, %v277_v28 }
 0x1d2   :  { %719 = vmatmul.msk.bf16.vlgmr.msrb.gmra.mxu3 %vm173_vm2, %v281_v30  ;;  %720 = vmatmul.msk.bf16.vlgmr.msra.gmra.mxu0 %vm173_vm2, %v281_v30 }
 0x1d3   :  { %721 = vmatmul.msk.bf16.vlgmr.msra.gmra.mxu1 %vm173_vm2, %v281_v30  ;;  %722 = vmatmul.msk.bf16.vlgmr.msra.gmra.mxu2 %vm173_vm2, %v281_v30 }
 0x211   :  { %v380_v31 = vpop.xlane.xlu2 %379 }
 0x212   :  { %758 = vrcp.f32 %v380_v31  ;;  %v395_v42 = vand.u32 2147483648, %v380_v31  ;;  %vm389_vm5 = vweird.f32 %v380_v31  ;;  %v393_v43 = vand.u32 2147483647, %v380_v31 }
 0x214   :  { %v396_v49 = vor.u32 1.1754944e-38, %v395_v42  ;;  %vm394_vm8 = vcmp.eq.f32.partialorder %v393_v43, 8.507059e+37 }
 0x218   :  { %v759_v32 = vpop.eup %758 }
 0x219   :  { %v385_v33 = vmul.f32 %v759_v32, %v380_v31  ;;  %v383_v34 = vpop.xlane.xlu2 %382  ;;  %vm390_vm4 = vweird.f32 %v759_v32 }
 0x21a   :  { %760 = vrcp.f32 %v383_v34  ;;  %vm391_vm6 = vmor %vm389_vm5, %vm390_vm4  ;;  %v410_v45 = vand.u32 2147483648, %v383_v34  ;;  %v408_v47 = vand.u32 2147483647, %v383_v34  ;;  %vm404_vm9 = vweird.f32 %v383_v34 }
 0x21b   :  { %v386_v35 = vsub.f32 1.0, %v385_v33 }
 0x21c   :  { %v411_v51 = vor.u32 1.1754944e-38, %v410_v45  ;;  %vm409_vm11 = vcmp.eq.f32.partialorder %v408_v47, 8.507059e+37 }
 0x21d   :  { %v387_v36 = vmul.f32 %v759_v32, %v386_v35 }
 0x21f   :  { %v388_v39 = vadd.f32 %v759_v32, %v387_v36 }
 0x220   :  { %v761_v38 = vpop.eup %760 }
 0x221   :  { %v400_v40 = vmul.f32 %v761_v38, %v383_v34  ;;  %v196_v41 = vpop.permute.xlu2 %195  ;;  %vm405_vm7 = vweird.f32 %v761_v38  ;;  %v392_v48 = vsel %vm391_vm6, %v759_v32, %v388_v39 }
 0x222   :  { %201 = vst.msk [vmem:[%s1157_s5] sm:$0xff] %vm50_vm1, %v196_v41  ;;  %vm406_vm10 = vmor %vm404_vm9, %vm405_vm7  ;;  %v397_v52 = vsel %vm394_vm8, %v396_v49, %v392_v48 }
 0x223   :  { %v401_v44 = vsub.f32 1.0, %v400_v40  ;;  %v398_v55 = vmul.f32 %v919_v62, %v397_v52 }
 0x225   :  { %v402_v46 = vmul.f32 %v761_v38, %v401_v44 }
 0x227   :  { %v403_v50 = vadd.f32 %v761_v38, %v402_v46 }
 0x229   :  { %v407_v53 = vsel %vm406_vm10, %v761_v38, %v403_v50 }
 0x22a   :  { %v412_v54 = vsel %vm409_vm11, %v411_v51, %v407_v53 }
 0x22b   :  { %v413_v56 = vmul.f32 %v923_v0, %v412_v54 }
 0x22d   :  { %v746_v57 = vpack.i.bf16 %v413_v56, %v398_v55 }
 0x22f   :  { %747 = vrot.lane.b32.xlu0 %v746_v57, %s794_s11 }
 0x237   :  { %197 = vrot.lane.b32.xlu0 %v895_v37, %s794_s11 }
 0x24f   :  { %v316_v58 = vpop.f32.mrf.mxu0 }
 0x250   :  { %350 = vst [vmem:[%s1158_s6 + $0x8] sm:$0xff] %v316_v58  ;;  %v724_v59 = vmul.f32 -1.442695, %v316_v58  ;;  %v330_v60 = vpop.f32.mrf.mxu1  ;;  %v414_v58 = vlaneseq }
 0x251   :  { %351 = vst [vmem:[%s1158_s6 + $0x10] sm:$0xff] %v330_v60  ;;  %v725_v61 = vmul.f32 -1.442695, %v330_v60 }
 0x252   :  { %762 = vpow2.f32 %v724_v59 }
 0x253   :  { %764 = vpow2.f32 %v725_v61 }
 0x255   :  { %v302_v62 = vpop.f32.mrf.mxu3 }
 0x256   :  { %349 = vst [vmem:[%s1158_s6] sm:$0xff] %v302_v62  ;;  %v723_v37 = vmul.f32 -1.442695, %v302_v62  ;;  %v344_v63 = vpop.f32.mrf.mxu2 }
 0x257   :  { %352 = vst [vmem:[%s1158_s6 + $0x18] sm:$0xff] %v344_v63  ;;  %v726_v0 = vmul.f32 -1.442695, %v344_v63  ;;  %v318_v1 = vpop.f32.mrf.mxu0 }
 0x258   :  { %v763_v2 = vpop.eup %762  ;;  %766 = vpow2.f32 %v723_v37  ;;  %354 = vst [vmem:[%s1158_s6 + $0x28] sm:$0xff] %v318_v1  ;;  %v728_v3 = vmul.f32 -1.442695, %v318_v1  ;;  %v332_v4 = vpop.f32.mrf.mxu1 }
 0x259   :  { %v765_v5 = vpop.eup %764  ;;  %v966_v6 = vadd.f32 1.0, %v763_v2  ;;  %768 = vpow2.f32 %v726_v0  ;;  %355 = vst [vmem:[%s1158_s6 + $0x30] sm:$0xff] %v332_v4  ;;  %v729_v7 = vmul.f32 -1.442695, %v332_v4 }
 0x25a   :  { %v971_v8 = vadd.f32 1.0, %v765_v5  ;;  %770 = vpow2.f32 %v728_v3 }
 0x25b   :  { %772 = vrcp.f32 %v966_v6  ;;  %v483_v20 = vand.u32 2147483647, %v966_v6  ;;  %v485_v21 = vand.u32 2147483648, %v966_v6  ;;  %vm479_vm12 = vweird.f32 %v966_v6 }
 0x25c   :  { %774 = vrcp.f32 %v971_v8  ;;  %v498_v24 = vand.u32 2147483647, %v971_v8  ;;  %v500_v25 = vand.u32 2147483648, %v971_v8  ;;  %vm494_vm13 = vweird.f32 %v971_v8 }
 0x25d   :  { %776 = vpow2.f32 %v729_v7  ;;  %v304_v9 = vpop.f32.mrf.mxu3  ;;  %v486_v31 = vor.u32 1.1754944e-38, %v485_v21  ;;  %vm1008_vm14 = vcmp.eq.f32.partialorder %v483_v20, 8.507059e+37 }
 0x25e   :  { %v767_v10 = vpop.eup %766  ;;  %353 = vst [vmem:[%s1158_s6 + $0x20] sm:$0xff] %v304_v9  ;;  %v727_v11 = vmul.f32 -1.442695, %v304_v9  ;;  %v346_v12 = vpop.f32.mrf.mxu2  ;;  %vm1013_vm15 = vcmp.eq.f32.partialorder %v498_v24, 8.507059e+37  ;;  %v501_v38 = vor.u32 1.1754944e-38, %v500_v25 }
 0x25f   :  { %v769_v13 = vpop.eup %768  ;;  %v978_v14 = vadd.f32 1.0, %v767_v10  ;;  %356 = vst [vmem:[%s1158_s6 + $0x38] sm:$0xff] %v346_v12  ;;  %v730_v17 = vmul.f32 -1.442695, %v346_v12 }
 0x260   :  { %v771_v15 = vpop.eup %770  ;;  %v983_v16 = vadd.f32 1.0, %v769_v13  ;;  %778 = vpow2.f32 %v727_v11 }
 0x261   :  { %v985_v18 = vpop.eup %772  ;;  %780 = vrcp.f32 %v978_v14  ;;  %v988_v19 = vadd.f32 1.0, %v771_v15  ;;  %v468_v46 = vand.u32 2147483647, %v978_v14  ;;  %v470_v49 = vand.u32 2147483648, %v978_v14 }
 0x262   :  { %v992_v22 = vpop.eup %774  ;;  %v475_v23 = vmul.f32 %v985_v18, %v966_v6  ;;  %782 = vrcp.f32 %v983_v16  ;;  %vm480_vm0 = vweird.f32 %v985_v18  ;;  %vm464_vm6 = vweird.f32 %v978_v14 }
 0x263   :  { %v777_v26 = vpop.eup %776  ;;  %v490_v27 = vmul.f32 %v992_v22, %v971_v8  ;;  %784 = vrcp.f32 %v988_v19  ;;  %v543_v35 = vand.u32 2147483647, %v988_v19  ;;  %v545_v41 = vand.u32 2147483648, %v988_v19  ;;  %vm1042_vm4 = vmor %vm479_vm12, %vm480_vm0 }
 0x264   :  { %v476_v28 = vsub.f32 1.0, %v475_v23  ;;  %v1002_v29 = vadd.f32 1.0, %v777_v26  ;;  %786 = vpow2.f32 %v730_v17  ;;  %vm495_vm2 = vweird.f32 %v992_v22 }
 0x265   :  { %v491_v30 = vsub.f32 1.0, %v490_v27  ;;  %vm539_vm3 = vweird.f32 %v988_v19  ;;  %vm1046_vm5 = vcmp.eq.f32.partialorder %v543_v35, 8.507059e+37  ;;  %v546_v57 = vor.u32 1.1754944e-38, %v545_v41  ;;  %vm1057_vm7 = vmor %vm494_vm13, %vm495_vm2 }
 0x266   :  { %v779_v32 = vpop.eup %778  ;;  %788 = vrcp.f32 %v1002_v29  ;;  %v477_v33 = vmul.f32 %v985_v18, %v476_v28  ;;  %vm554_vm8 = vweird.f32 %v1002_v29  ;;  %v558_v59 = vand.u32 2147483647, %v1002_v29 }
 0x267   :  { %v1017_v39 = vpop.eup %780  ;;  %v1019_v40 = vadd.f32 1.0, %v779_v32  ;;  %v492_v42 = vmul.f32 %v992_v22, %v491_v30  ;;  %v560_v63 = vand.u32 2147483648, %v1002_v29  ;;  %v471_v4 = vor.u32 1.1754944e-38, %v470_v49 }
 0x268   :  { %v1024_v43 = vpop.eup %782  ;;  %v460_v44 = vmul.f32 %v1017_v39, %v978_v14  ;;  %v478_v45 = vadd.f32 %v985_v18, %v477_v33  ;;  %vm465_vm9 = vweird.f32 %v1017_v39  ;;  %vm1078_vm11 = vcmp.eq.f32.partialorder %v558_v59, 8.507059e+37 }
 0x269   :  { %v785_v47 = vpop.eup %784  ;;  %790 = vrcp.f32 %v1019_v40  ;;  %v493_v48 = vadd.f32 %v992_v22, %v492_v42  ;;  %v505_v52 = vmul.f32 %v1024_v43, %v983_v16  ;;  %v561_v12 = vor.u32 1.1754944e-38, %v560_v63 }
 0x26a   :  { %v787_v50 = vpop.eup %786  ;;  %v461_v51 = vsub.f32 1.0, %v460_v44  ;;  %v535_v53 = vmul.f32 %v785_v47, %v988_v19  ;;  %v482_v62 = vsel %vm1042_vm4, %v985_v18, %v478_v45  ;;  %vm540_vm10 = vweird.f32 %v785_v47 }
 0x26b   :  { %v1051_v56 = vadd.f32 1.0, %v787_v50  ;;  %v497_v37 = vsel %vm1057_vm7, %v992_v22, %v493_v48  ;;  %v506_v2 = vsub.f32 1.0, %v505_v52  ;;  %v487_v7 = vsel %vm1008_vm14, %v486_v31, %v482_v62  ;;  %vm541_vm0 = vmor %vm539_vm3, %vm540_vm10 }
 0x26c   :  { %v789_v60 = vpop.eup %788  ;;  %v536_v61 = vsub.f32 1.0, %v535_v53  ;;  %v462_v1 = vmul.f32 %v1017_v39, %v461_v51  ;;  %v502_v8 = vsel %vm1013_vm15, %v501_v38, %v497_v37  ;;  %vm1083_vm13 = vcmp.eq.f32.partialorder %v468_v46, 8.507059e+37  ;;  %vm1100_vm15 = vmor %vm464_vm6, %vm465_vm9 }
 0x26d   :  { %v550_v0 = vmul.f32 %v789_v60, %v1002_v29  ;;  %792 = vrcp.f32 %v1051_v56  ;;  %vm555_vm12 = vweird.f32 %v789_v60  ;;  %v528_v18 = vand.u32 2147483647, %v1019_v40 }
 0x26e   :  { %v537_v3 = vmul.f32 %v785_v47, %v536_v61  ;;  %v463_v17 = vadd.f32 %v1017_v39, %v462_v1  ;;  %v530_v20 = vand.u32 2147483648, %v1019_v40  ;;  %vm524_vm14 = vweird.f32 %v1019_v40  ;;  %vm556_vm4 = vmor %vm554_vm8, %vm555_vm12 }
 0x26f   :  { %v791_v5 = vpop.eup %790  ;;  %v551_v6 = vsub.f32 1.0, %v550_v0  ;;  %v507_v23 = vmul.f32 %v1024_v43, %v506_v2  ;;  %vm509_vm2 = vweird.f32 %v983_v16  ;;  %vm510_vm3 = vweird.f32 %v1024_v43 }
 0x270   :  { %v520_v10 = vmul.f32 %v791_v5, %v1019_v40  ;;  %v538_v11 = vadd.f32 %v785_v47, %v537_v3  ;;  %v467_v14 = vsel %vm1100_vm15, %v1017_v39, %v463_v17  ;;  %vm1113_vm6 = vcmp.eq.f32.partialorder %v528_v18, 8.507059e+37  ;;  %vm511_vm9 = vmor %vm509_vm2, %vm510_vm3 }
 0x271   :  { %v552_v15 = vmul.f32 %v789_v60, %v551_v6  ;;  %v531_v33 = vor.u32 1.1754944e-38, %v530_v20  ;;  %v508_v29 = vadd.f32 %v1024_v43, %v507_v23  ;;  %v513_v41 = vand.u32 2147483647, %v983_v16 }
 0x272   :  { %v521_v21 = vsub.f32 1.0, %v520_v10  ;;  %v542_v22 = vsel %vm541_vm0, %v785_v47, %v538_v11  ;;  %v515_v39 = vand.u32 2147483648, %v983_v16  ;;  %v575_v42 = vand.u32 2147483648, %v1051_v56 }
 0x273   :  { %v793_v24 = vpop.eup %792  ;;  %v547_v25 = vsel %vm1046_vm5, %v546_v57, %v542_v22  ;;  %v553_v26 = vadd.f32 %v789_v60, %v552_v15  ;;  %vm525_vm5 = vweird.f32 %v791_v5  ;;  %v573_v46 = vand.u32 2147483647, %v1051_v56 }
 0x274   :  { %v565_v27 = vmul.f32 %v793_v24, %v1051_v56  ;;  %v581_v28 = vpack.c.bf16 %v547_v25, %v487_v7  ;;  %v522_v30 = vmul.f32 %v791_v5, %v521_v21  ;;  %vm526_vm7 = vmor %vm524_vm14, %vm525_vm5  ;;  %vm570_vm8 = vweird.f32 %v793_v24 }
 0x275   :  { %v557_v31 = vsel %vm556_vm4, %v789_v60, %v553_v26  ;;  %v472_v47 = vsel %vm1083_vm13, %v471_v4, %v467_v14  ;;  %v512_v49 = vsel %vm511_vm9, %v1024_v43, %v508_v29  ;;  %vm569_vm10 = vweird.f32 %v1051_v56 }
 0x276   :  { %v566_v34 = vsub.f32 1.0, %v565_v27  ;;  %624 = vmatpush.bf16.msrb.mxu0 %v581_v28  ;;  %v562_v35 = vsel %vm1078_vm11, %v561_v12, %v557_v31  ;;  %v523_v36 = vadd.f32 %v791_v5, %v522_v30  ;;  %v516_v51 = vor.u32 1.1754944e-38, %v515_v39  ;;  %vm571_vm11 = vmor %vm569_vm10, %vm570_vm8 }
 0x277   :  { %v582_v38 = vpack.c.bf16 %v562_v35, %v502_v8  ;;  %v576_v52 = vor.u32 1.1754944e-38, %v575_v42  ;;  %vm514_vm12 = vcmp.eq.f32.partialorder %v513_v41, 8.507059e+37  ;;  %vm574_vm13 = vcmp.eq.f32.partialorder %v573_v46, 8.507059e+37 }
 0x278   :  { %v527_v44 = vsel %vm526_vm7, %v791_v5, %v523_v36  ;;  %v567_v45 = vmul.f32 %v793_v24, %v566_v34  ;;  %v517_v54 = vsel %vm514_vm12, %v516_v51, %v512_v49  ;;  %v415_v16 = vand.u32 127, %v414_v58 }
 0x279   :  { %637 = vmatpush.bf16.msrb.mxu1 %v582_v38  ;;  %v532_v48 = vsel %vm1113_vm6, %v531_v33, %v527_v44  ;;  %vm600_vm14 = vcmask 130048  }
 0x27a   :  { %v580_v40 = vpack.c.bf16 %v532_v48, %v472_v47  ;;  %v568_v50 = vadd.f32 %v793_v24, %v567_v45  ;;  %vm416_vm0 = vcmp.lt.s32.totalorder %v415_v16, 4 }
 0x27c   :  { %611 = vmatpush.bf16.msra.mxu3 %v580_v40  ;;  %v572_v53 = vsel %vm571_vm11, %v793_v24, %v568_v50 }
 0x27d   :  { %v577_v55 = vsel %vm574_vm13, %v576_v52, %v572_v53 }
 0x27e   :  { %v583_v57 = vpack.c.bf16 %v577_v55, %v517_v54 }
 0x280   :  { %650 = vmatpush.bf16.msrb.mxu2 %v583_v57 }
 0x2a1   :  { %v748_v59 = vpop.permute.xlu0 %747 }
 0x2a2   :  { %v750_v60 = vunpack.i.h.bf16 %v748_v59  ;;  %v749_v43 = vunpack.i.l.bf16 %v748_v59 }
 0x2a4   :  { %v425_v61 = vsel %vm416_vm0, %v749_v43, 0.0  ;;  %v426_v62 = vsel %vm416_vm0, %v750_v60, 0.0 }
 0x2a5   :  { %v579_v56 = vpack.c.bf16 %v426_v62, %v425_v61 }
 0x2a7   :  { %584 = vxpose.xlu1.c.b16.start.end [1/1] (short) (narrow) %v579_v56, 16 }
 0x2a9   :  { %v198_v37 = vpop.permute.xlu0 %197 }
 0x2aa   :  { %202 = vst.msk [vmem:[%s1157_s5 + $0x8] sm:$0xff] %vm50_vm1, %v198_v37 }
 0x353   :  { %v592_v63 = vpop.trf.xlu1 }
 0x354   :  { %731 = vmatmul.msk.bf16.vlgmr.msra.gmra.mxu3 %vm600_vm14, %v592_v63  ;;  %732 = vmatmul.msk.bf16.vlgmr.msrb.gmra.mxu0 %vm600_vm14, %v592_v63 }
 0x355   :  { %733 = vmatmul.msk.bf16.vlgmr.msrb.gmra.mxu1 %vm600_vm14, %v592_v63  ;;  %734 = vmatmul.msk.bf16.vlgmr.msrb.gmra.mxu2 %vm600_vm14, %v592_v63 }
 0x3d1   :  { %v626_v0 = vpop.f32.mrf.mxu0 }
 0x3d2   :  { %657 = vst [vmem:[%s1159_s7 + $0x8] sm:$0xff] %v626_v0  ;;  %v639_v1 = vpop.f32.mrf.mxu1 }
 0x3d3   :  { %658 = vst [vmem:[%s1159_s7 + $0x10] sm:$0xff] %v639_v1 }
 0x3d7   :  { %v613_v2 = vpop.f32.mrf.mxu3 }
 0x3d8   :  { %656 = vst [vmem:[%s1159_s7] sm:$0xff] %v613_v2  ;;  %v652_v3 = vpop.f32.mrf.mxu2 }
 0x3d9   :  { %659 = vst [vmem:[%s1159_s7 + $0x18] sm:$0xff] %v652_v3  ;;  %v628_v4 = vpop.f32.mrf.mxu0 }
 0x3da   :  { %v641_v5 = vpop.f32.mrf.mxu1 }
 0x3df   :  { %v615_v6 = vpop.f32.mrf.mxu3 }
 0x3e0   :  { %v654_v7 = vpop.f32.mrf.mxu2 }

</bundles_post_ra>
